<compile_context>
chip_gen: v7x
topology: tpu7x:2x2x1
jax: 0.10.0
libtpu: 0.0.40
codegen_flags: <defaults>
</compile_context>

<pallas_src>
import jax
import jax.numpy as jnp
from jax.experimental import pallas as pl
from jax.experimental.pallas import tpu as pltpu

_LANE = 128


def _swish_kernel(x_ref, o_ref):
    # Exact f32 swish.  exp rides the EUP slot; the divide's extra VALU work is
    # hidden under the block DMA (kernel is HBM-bound), so no approx reciprocal
    # and no bf16 exp shortcut.
    xf = x_ref[...].astype(jnp.float32)
    y = xf / (1.0 + jnp.exp(-xf))
    o_ref[...] = y.astype(o_ref.dtype)


def _round_up(a: int, b: int) -> int:
    return ((a + b - 1) // b) * b


def _chip_config():
    """(block_bytes, vmem_limit_bytes, two_tensorcores) per TPU generation."""
    try:
        kind = jax.devices()[0].device_kind.lower()
    except Exception:
        kind = ""
    if "v7" in kind or "7x" in kind:
        # v7x: ~1.6 TB/s HBM per TC, so 2 MiB blocks leave 13-27% per-step
        # overhead; 8 MiB blocks cut that to <7%.  Pipelined footprint is
        # 4 x 8 MiB = 32 MiB, which sits at the 32 MiB scoped-VMEM default,
        # so raise the limit (64 MiB physical per TC).
        return 8 * 1024 * 1024, 48 * 1024 * 1024, True
    if "v6" in kind:
        # v6e: ~4 MiB blocks reach ~85% of the HBM roofline; 16 MiB footprint
        # stays under the 32 MiB scoped default — no flag needed.
        return 4 * 1024 * 1024, None, False
    # v5e / unknown / interpret: 2 MiB blocks already take ~5 us of DMA so the
    # ~0.35 us step overhead is small; 8 MiB footprint fits the 16 MiB default.
    return 2 * 1024 * 1024, None, False


def _as_2d(x: jax.Array) -> jax.Array:
    """Zero-copy 2D view (R, C) of x (pure reshape of a contiguous array)."""
    n = x.size
    if n % _LANE == 0:
        # Lane-dense and fully contiguous per block: the best layout.
        return x.reshape(n // _LANE, _LANE)
    # Merge trailing dims until the lane axis is >= 128 (or we run out).
    c = 1
    for d in reversed(x.shape):
        c *= int(d)
        if c >= _LANE:
            break
    return x.reshape(n // c, c)


def swish(x: jax.Array) -> jax.Array:
    """Elementwise swish (x * sigmoid(x)) on an arbitrary-shaped array."""
    orig_shape, orig_dtype = x.shape, x.dtype
    n = x.size
    if n == 0:
        return x

    block_bytes, vmem_limit, two_tc = _chip_config()
    itemsize = jnp.dtype(orig_dtype).itemsize
    # Sublane granularity: 8 for 32-bit, 16 for bf16, 32 for 8-bit dtypes.
    sublane = max(8, 32 // itemsize)

    x2d = _as_2d(x)
    R, C = x2d.shape

    # VMEM footprint accounting uses the (sublane, 128)-padded tile sizes.
    padded_row_bytes = _round_up(C, _LANE) * itemsize
    min_rows = R if R < sublane else sublane

    if padded_row_bytes * _round_up(min_rows, sublane) > block_bytes:
        # Even one row-group at the full lane extent blows the budget:
        # chunk the lane axis in multiples of 128 (ragged tail is masked).
        tile_r = min_rows
        rp = _round_up(tile_r, sublane)
        tile_c = max(_LANE, (block_bytes // (rp * itemsize)) // _LANE * _LANE)
    else:
        # Block along rows only; keep the full lane extent so every block's
        # HBM region is contiguous.  Ragged last row-block is masked by Pallas.
        tile_c = C
        tile_r = (block_bytes // padded_row_bytes) // sublane * sublane
        tile_r = R if tile_r >= R else max(tile_r, sublane)

    # On 2-TC chips (v7x) make sure small inputs still produce >= 2 grid steps
    # so the parallel grid can shard across both TensorCores; on 1-TC chips the
    # extra step is pure overhead, so skip it.
    if two_tc and tile_r >= R and tile_c >= C and R >= 2 * sublane:
        tile_r = _round_up(pl.cdiv(R, 2), sublane)

    grid = (pl.cdiv(R, tile_r), pl.cdiv(C, tile_c))

    out = pl.pallas_call(
        _swish_kernel,
        out_shape=jax.ShapeDtypeStruct((R, C), orig_dtype),
        grid_spec=pltpu.PrefetchScalarGridSpec(
            num_scalar_prefetch=0,
            grid=grid,
            in_specs=[pl.BlockSpec((tile_r, tile_c), lambda i, j: (i, j))],
            out_specs=pl.BlockSpec((tile_r, tile_c), lambda i, j: (i, j)),
        ),
        compiler_params=pltpu.CompilerParams(
            # Both grid axes are independent.  If an xprof trace ever shows a
            # v7x chip running the whole grid on one TensorCore, switch the row
            # axis to pltpu.CORE_PARALLEL (or split via pl.core_map).
            dimension_semantics=("parallel", "parallel"),
            vmem_limit_bytes=vmem_limit,
        ),
    )(x2d)

    return out.reshape(orig_shape)


if __name__ == "__main__":
    key = jax.random.PRNGKey(0)

    # NCHW like the PyTorch conv-net context: batch=2, channels=4, spatial=16.
    x = jax.random.normal(key, (2, 4, 16, 16), dtype=jnp.float32)
    y = jax.block_until_ready(swish(x))
    y_ref = x * jax.nn.sigmoid(x)
    assert y.shape == x.shape and y.dtype == x.dtype
    assert float(jnp.max(jnp.abs(y - y_ref))) < 1e-4

    # Non-128-multiple element count: exercises the zero-copy trailing-merge
    # (R, C) view instead of the old pad + slice path.
    x2 = jax.random.normal(jax.random.PRNGKey(1), (2, 3, 33, 33), dtype=jnp.float32)
    y2 = jax.block_until_ready(swish(x2))
    y2_ref = x2 * jax.nn.sigmoid(x2)
    assert y2.shape == x2.shape and y2.dtype == x2.dtype
    assert float(jnp.max(jnp.abs(y2 - y2_ref))) < 1e-4

    print("KERNEL_OK")
</pallas_src>

<mosaic_0001>
module attributes {stable_mosaic.version = 11 : i64} {
  func.func @_swish_kernel(%arg0: i32, %arg1: i32, %arg2: memref<16x128xf32, #tpu.memory_space<vmem>>, %arg3: memref<16x128xf32, #tpu.memory_space<vmem>>) attributes {dimension_semantics = [#tpu.dimension_semantics<parallel>, #tpu.dimension_semantics<parallel>], iteration_bounds = array<i64: 1, 1>, scalar_prefetch = 0 : i64, scratch_operands = 0 : i64, tpu.core_type = #tpu.core_type<tc>, window_params = [{transform_indices = @transform_0, window_bounds = array<i64: 16, 128>}, {transform_indices = @transform_1, window_bounds = array<i64: 16, 128>}]} {
    %c0 = arith.constant 0 : index
    %c0_0 = arith.constant 0 : index
    %0 = vector.load %arg2[%c0, %c0_0] : memref<16x128xf32, #tpu.memory_space<vmem>>, vector<16x128xf32>
    %cst = arith.constant 0.000000e+00 : f32
    %1 = vector.broadcast %cst : f32 to vector<16x128xf32>
    %2 = arith.subf %1, %0 : vector<16x128xf32>
    %3 = math.exp %2 : vector<16x128xf32>
    %cst_1 = arith.constant 1.000000e+00 : f32
    %4 = vector.broadcast %cst_1 : f32 to vector<16x128xf32>
    %5 = arith.addf %4, %3 : vector<16x128xf32>
    %6 = arith.divf %0, %5 : vector<16x128xf32>
    %c0_2 = arith.constant 0 : index
    %c0_3 = arith.constant 0 : index
    %7 = vector.load %arg3[%c0_2, %c0_3] : memref<16x128xf32, #tpu.memory_space<vmem>>, vector<16x128xf32>
    tpu.vector_store %arg3[%c0_2, %c0_3], %6 {strides = array<i32>} : memref<16x128xf32, #tpu.memory_space<vmem>>, vector<16x128xf32>,
    return
  }
  func.func @transform_0(%arg0: i32, %arg1: i32) -> (i32, i32) {
    %c0_i32 = arith.constant 0 : i32
    return %arg0, %arg1 : i32, i32
  }
  func.func @transform_1(%arg0: i32, %arg1: i32) -> (i32, i32) {
    %c0_i32 = arith.constant 0 : i32
    return %arg0, %arg1 : i32, i32
  }
}

</mosaic_0001>

<bundles_post_ra>
// kernel: tpu_custom_call.1
= control target key start
LH: loop header
LB: loop body
LE: loop exit
PB: predicated region body
PF: predicated region fallthrough
CT: control target
= control target key end

     0   :  { %6 = vsyncpa [#allocation3], 0  ;;  %s160_s0 = inlined_call_operand.hbm [shape: f32[16,128], index: 0, kind: input, shape index: {}]   ;;  %s161_s1 = inlined_call_operand.hbm [shape: f32[16,128], index: 1, kind: output, shape index: {}]  }
   0x1   :  { %7 = vsyncpa [#allocation4], 0  ;;  %s116_s6 = smov [#allocation2]   ;;  %s68_s10 = scalar_lea.hbm %s160_s0, 256 }
   0x2   :  { %s13_s7 = sshll.u32 %s116_s6, 4  ;;  %p69_p0 = scmp.ne.s32.totalorder %s160_s0, %s68_s10  ;;  %s14_s7 = int_to_ptr.vmem [resolvable:$true] %s13_s7 }
   0x3   :  { %p72_p1 = scmp.lt.u32.totalorder %s68_s10, %s160_s0 }
   0x5   :  { %p74_p2 = pnand %p72_p1, %p69_p0 }
   0x7   :  { %77 = shalt.err (!%p74_p2)
}
   0x8   :  { %s78_s15 = scalar_lea.vmem %s14_s7, 256  ;;  %p83_p4 = scmp.lt.s32.totalorder %s14_s7, %s14_s7 }
   0x9   :  { %p79_p3 = scmp.ne.s32.totalorder %s14_s7, %s78_s15  ;;  %p84_p5 = scmp.lt.s32.totalorder %s78_s15, %s78_s15 }
   0xb   :  { %p85_p6 = por %p84_p5, %p83_p4 }
   0xd   :  { %p86_p7 = pnand %p85_p6, %p79_p3 }
   0xf   :  { %89 = shalt.err (!%p86_p7)
}
  0x10   :  { %s117_s16 = smov 128   ;;  %s118_s17 = smov 8  }
  0x11   :  { %19 = dma.hbm_to_vmem [thread:$0]  %s160_s0, 256, %s14_s7, [#allocation3], %s117_s16, %s117_s16, %s118_s17  }
  0x12   :  { %112 = dma.done.wait [#allocation3], 256  }
  0x13   :  { %113 = vsyncadd [#allocation3], 4294967040  ;;  %v23_v0 = vld [vmem:[#allocation2] sm:$0xff]  ;;  %v24_v1 = vld [vmem:[#allocation2 + $0x8] sm:$0xff]  ;;  %s119_s20 = smov [#allocation5]  }
  0x14   :  { %v25_v2 = vsub.f32 0.0, %v23_v0  ;;  %v26_v3 = vsub.f32 0.0, %v24_v1  ;;  %s44_s21 = sshll.u32 %s119_s20, 4  ;;  %s45_s21 = int_to_ptr.vmem [resolvable:$true] %s44_s21 }
  0x15   :  { %s90_s0 = scalar_lea.vmem %s45_s21, 256  ;;  %p95_p9 = scmp.lt.s32.totalorder %s45_s21, %s45_s21 }
  0x16   :  { %v27_v4 = vmul.f32 1.442695, %v25_v2  ;;  %v29_v5 = vmul.f32 1.442695, %v26_v3  ;;  %p91_p8 = scmp.ne.s32.totalorder %s45_s21, %s90_s0  ;;  %p96_p10 = scmp.lt.s32.totalorder %s90_s0, %s90_s0 }
  0x18   :  { %60 = vpow2.f32 %v27_v4  ;;  %p97_p11 = por %p96_p10, %p95_p9 }
  0x19   :  { %62 = vpow2.f32 %v29_v5 }
  0x1a   :  { %p98_p12 = pnand %p97_p11, %p91_p8 }
  0x22   :  { %v61_v6 = vpop.eup %60 }
  0x23   :  { %v63_v7 = vpop.eup %62  ;;  %v31_v8 = vadd.f32 1.0, %v61_v6 }
  0x24   :  { %v32_v9 = vadd.f32 1.0, %v63_v7 }
  0x25   :  { %64 = vrcp.f32 %v31_v8 }
  0x26   :  { %66 = vrcp.f32 %v32_v9 }
  0x2f   :  { %v65_v10 = vpop.eup %64 }
  0x30   :  { %v67_v11 = vpop.eup %66  ;;  %v34_v12 = vmul.f32 %v65_v10, %v23_v0 }
  0x31   :  { %v36_v13 = vmul.f32 %v67_v11, %v24_v1 }
  0x32   :  { %37 = vst [vmem:[#allocation5] sm:$0xff] %v34_v12 }
  0x33   :  { %38 = vst [vmem:[#allocation5 + $0x8] sm:$0xff] %v36_v13 }
  0x34   :  { %101 = shalt.err (!%p98_p12)
}
  0x35   :  { %s102_s24 = scalar_lea.hbm %s161_s1, 256 }
  0x36   :  { %p103_p13 = scmp.ne.s32.totalorder %s161_s1, %s102_s24  ;;  %p106_p0 = scmp.lt.u32.totalorder %s102_s24, %s161_s1 }
  0x38   :  { %p108_p1 = pnand %p106_p0, %p103_p13 }
  0x3a   :  { %111 = shalt.err (!%p108_p1)
}
  0x3b   :  { %50 = dma.vmem_to_hbm [thread:$0]  %s45_s21, 256, %s161_s1, [#allocation4], %s117_s16, %s117_s16, %s118_s17  }
  0x3c   :  { %114 = dma.done.wait [#allocation4], 256  }
  0x3d   :  { %115 = vsyncadd [#allocation4], 4294967040 }
  0x3e   :  { %54 = vsyncpa [#allocation3], 1 }
  0x3f   :  { %55 = vsyncpa [#allocation4], 1 }

</bundles_post_ra>
